<compile_context>
chip_gen: v6e
topology: v6e:2x2x1
jax: 0.10.0
libtpu: 0.0.40
codegen_flags: <defaults>
</compile_context>

<pallas_src>
import jax
import jax.numpy as jnp
from jax.experimental import pallas as pl
from jax.experimental.pallas import tpu as pltpu


_LANE = 512        # lane-dense last dim, multiple of 128
_TILE_ROWS = 256   # rows per block, multiple of 8 (block = 512 KiB for f32)


def _relu_kernel(x_ref, o_ref):
    # One VALU max-with-immediate per vreg; elementwise over the whole tile.
    o_ref[...] = jnp.maximum(x_ref[...], 0)


def pallas_relu(x: jax.Array) -> jax.Array:
    """Elementwise ReLU of an arbitrary-shaped array via a Pallas TPU kernel."""
    orig_shape = x.shape
    dtype = x.dtype
    n = x.size

    # Flatten and pad to a multiple of the lane width so the 2D view is
    # lane-dense (every vld/vst unmasked).
    flat = x.reshape(-1)
    padded = pl.cdiv(n, _LANE) * _LANE
    if padded != n:
        flat = jnp.pad(flat, (0, padded - n))
    rows = padded // _LANE
    x2d = flat.reshape(rows, _LANE)

    # Row tile: multiple of 8, capped so tiny inputs still get a legal block.
    tile_rows = min(_TILE_ROWS, ((rows + 7) // 8) * 8)
    grid = (pl.cdiv(rows, tile_rows),)

    out2d = pl.pallas_call(
        _relu_kernel,
        out_shape=jax.ShapeDtypeStruct((rows, _LANE), dtype),
        grid=grid,
        in_specs=[pl.BlockSpec((tile_rows, _LANE), lambda i: (i, 0))],
        out_specs=pl.BlockSpec((tile_rows, _LANE), lambda i: (i, 0)),
        input_output_aliases={0: 0},  # in-place ReLU in the original module
        compiler_params=pltpu.CompilerParams(
            dimension_semantics=("parallel",)  # shard tiles across TCs on v7x
        ),
    )(x2d)

    out_flat = out2d.reshape(-1)
    if padded != n:
        out_flat = out_flat[:n]
    return out_flat.reshape(orig_shape)


if __name__ == "__main__":
    # Match the module's forward: x59 = randn([1, 240, 28, 28]); out = ReLU(x59)
    key = jax.random.PRNGKey(0)
    x59 = jax.random.normal(key, (1, 240, 28, 28), dtype=jnp.float32)

    out = pallas_relu(x59)
    out = jax.block_until_ready(out)

    # Correctness check against plain JAX reference.
    ref = jnp.maximum(x59, 0.0)
    assert out.shape == x59.shape
    assert out.dtype == x59.dtype
    assert bool(jnp.allclose(out, ref)), "Pallas ReLU mismatch vs reference"

    print("KERNEL_OK")
</pallas_src>

<mosaic_0001>
module attributes {stable_mosaic.version = 11 : i64} {
  func.func @_relu_kernel(%arg0: i32, %arg1: memref<256x512xf32, #tpu.memory_space<vmem>>, %arg2: memref<256x512xf32, #tpu.memory_space<vmem>>) attributes {dimension_semantics = [#tpu.dimension_semantics<parallel>], iteration_bounds = array<i64: 2>, scalar_prefetch = 0 : i64, scratch_operands = 0 : i64, tpu.core_type = #tpu.core_type<tc>, window_params = [{transform_indices = @transform_0, window_bounds = array<i64: 256, 512>}, {transform_indices = @transform_1, window_bounds = array<i64: 256, 512>}]} {
    %c0 = arith.constant 0 : index
    %c0_0 = arith.constant 0 : index
    %0 = vector.load %arg1[%c0, %c0_0] : memref<256x512xf32, #tpu.memory_space<vmem>>, vector<256x512xf32>
    %cst = arith.constant 0.000000e+00 : f32
    %1 = vector.broadcast %cst : f32 to vector<256x512xf32>
    %2 = arith.maximumf %0, %1 : vector<256x512xf32>
    %c0_1 = arith.constant 0 : index
    %c0_2 = arith.constant 0 : index
    %3 = vector.load %arg2[%c0_1, %c0_2] : memref<256x512xf32, #tpu.memory_space<vmem>>, vector<256x512xf32>
    tpu.vector_store %arg2[%c0_1, %c0_2], %2 {strides = array<i32>} : memref<256x512xf32, #tpu.memory_space<vmem>>, vector<256x512xf32>,
    return
  }
  func.func @transform_0(%arg0: i32) -> (i32, i32) {
    %c0_i32 = arith.constant 0 : i32
    %c0_i32_0 = arith.constant 0 : i32
    return %arg0, %c0_i32 : i32, i32
  }
  func.func @transform_1(%arg0: i32) -> (i32, i32) {
    %c0_i32 = arith.constant 0 : i32
    %c0_i32_0 = arith.constant 0 : i32
    return %arg0, %c0_i32 : i32, i32
  }
}

</mosaic_0001>

<bundles_post_ra>
// kernel: tpu_custom_call.1
= control target key start
LH: loop header
LB: loop body
LE: loop exit
PB: predicated region body
PF: predicated region fallthrough
CT: control target
= control target key end

     0   :  { %6 = vsyncpa [#allocation3], 0  ;;  %s1246_s0 = inlined_call_operand.hbm [shape: f32[368,512], index: 0, kind: input, shape index: {}, may-alias: {0,1}]   ;;  %s1247_s1 = inlined_call_operand.hbm [shape: f32[368,512], index: 1, kind: output, shape index: {}, may-alias: {0,1}]  }
   0x1   :  { %8 = vsyncpa [#allocation3 + $0x1], 0 }
   0x2   :  { %9 = vsyncpa [#allocation4], 0 }
   0x3   :  { %11 = vsyncpa [#allocation4 + $0x1], 0  ;;  %s817_s6 = smov 0   ;;  %s819_s7 = smov 0  }
   0x4   :  { %s821_s8 = smov 0   ;;  %s823_s9 = smov 0  }
   0x5 LB: > { %s838_s10 = sadd.s32 4294967295, %s799_s9   ;;  %s634_s11 = sadd.s32 4294967294, %s799_s9   ;;  %s799_s9 = sphi %s823_s9, %s1257_s9   ;;  %s795_s8 = sphi %s821_s8, %s1256_s8   ;;  %s791_s7 = sphi %s819_s7, %s1255_s7   ;;  %s787_s6 = sphi %s817_s6, %s1254_s6  }
   0x6   : > { %s842_s12 = sadd.s32 1, %s799_s9   ;;  %s24_s13 = sadd.s32 1, %s795_s8 }
   0x7   : > { %s21_s14 = ssub.s32 %s799_s9, %s842_s12  ;;  %p31_p0 = scmp.ne.s32.totalorder %s795_s8, %s791_s7 }
   0x8   : > { %p22_p1 = scmp.eq.s32.totalorder %s21_s14, 0  ;;  %p32_p2 = scmp.eq.s32.totalorder %s799_s9, 0 }
   0x9   : > { %p37_p3 = scmp.ne.s32.totalorder %s791_s7, %s787_s6  ;;  %p38_p4 = scmp.eq.s32.totalorder %s838_s10, 0 }
   0xa   : > { %s854_s15 = scalar_select %p22_p1, %s795_s8, %s24_s13  }
   0xb   : > { %p33_p5 = por %p32_p2, %p31_p0  ;;  %p856_p6 = por %p38_p4, %p37_p3 }
   0xc   : > { %p61_p7 = scmp.eq.s32.totalorder %s838_s10, 1  ;;  %p67_p8 = scmp.eq.s32.totalorder %s634_s11, 1 }
   0xd   : > { %p1248_p11 = scmp.ge.s32.totalorder %s799_s9, 2 }
   0xe   : > { %p861_p9 = por %p61_p7, %p31_p0  ;;  %p865_p10 = por %p67_p8, %p37_p3 }
   0xf   : > { %83 = sbr.rel (%p1248_p11) target bundleno = 52 (0x34), region = 16 }
  0x10   : > { %s1251_s18 = scalar_select %p865_p10, 1, 0 }
  0x14   : > { %86 = sbr.rel (!%p33_p5) target bundleno = 52 (0x34), region = 20  ;;  %s87_s19 = sand.u32 (%p33_p5), 1, %s795_s8  }
  0x15   : > { %s638_s20 = sshll.u32 (%p33_p5), %s799_s9, 5  ;;  %s637_s21 = sshll.u32 (%p33_p5), %s87_s19, 10 }
  0x16   : > { %s93_s22 = ssub.s32 (%p33_p5), 46, %s638_s20  ;;  %s877_s25 = scalar_lea.sflag (%p33_p5), [#allocation3], %s87_s19 }
  0x17   : > { %p94_p12 = scmp.lt.s32.totalorder (%p33_p5), %s93_s22, 32  ;;  %s91_s26 = scalar_lea.vmem (%p33_p5), [#allocation2], %s637_s21 }
  0x19   : > { %s1259_s22 = smov (!%p94_p12, %s93_s22), 32 }
  0x1a   : > { %s874_s23 = sshll.u32 %s1259_s22, 9 }
  0x1b   : > { %s99_s24 = ssub.s32 16384, %s874_s23 }
  0x1c   : > { %100 = vsyncadd %s877_s25, %s99_s24  ;;  %p641_p13 = scmp.ne.s32.totalorder %s874_s23, 0  ;;  %s662_s27 = sshll.u32 %s799_s9, 14 }
  0x1d   : > { %s885_s30 = scalar_lea.hbm %s1246_s0, %s662_s27  ;;  %s106_s2 = sshll.u32 %s91_s26, 4  ;;  %s887_s2 = int_to_ptr.vmem [resolvable:$true] %s106_s2 }
  0x1e   : > { %s709_s3 = scalar_lea.hbm %s885_s30, %s874_s23  ;;  %s713_s11 = scalar_lea.hbm %s1246_s0, 23552 }
  0x1f   : > { %p710_p0 = scmp.ne.s32.totalorder %s885_s30, %s709_s3  ;;  %p714_p3 = scmp.lt.s32.totalorder %s885_s30, %s1246_s0 }
  0x20   : > { %p715_p4 = scmp.lt.s32.totalorder %s713_s11, %s709_s3 }
  0x21   : > { %p711_p1 = pnand %p710_p0, %p641_p13 }
  0x22   : > { %p716_p5 = por %p715_p4, %p714_p3 }
  0x23   : > { %p712_p2 = pneg %p711_p1 }
  0x25   : > { %p717_p7 = pnand %p716_p5, %p712_p2 }
  0x27   : > { %720 = shalt.err (!%p717_p7)
}
  0x28   : > { %s721_s19 = scalar_lea.vmem %s887_s2, %s874_s23  ;;  %s801_s20 = smov [#allocation2]  }
  0x29   : > { %p722_p8 = scmp.ne.s32.totalorder %s887_s2, %s721_s19  ;;  %s725_s21 = sshll.u32 %s801_s20, 4  ;;  %s726_s21 = int_to_ptr.vmem [resolvable:$false] %s725_s21 }
  0x2a   : > { %s727_s22 = scalar_lea.vmem %s726_s21, 32768  ;;  %p728_p1 = scmp.lt.s32.totalorder %s887_s2, %s726_s21 }
  0x2b   : > { %p723_p12 = pnand %p722_p8, %p641_p13  ;;  %p729_p11 = scmp.lt.s32.totalorder %s727_s22, %s721_s19 }
  0x2d   : > { %p724_p0 = pneg %p723_p12  ;;  %p730_p10 = por %p729_p11, %p728_p1 }
  0x2f   : > { %p731_p3 = pnand %p730_p10, %p724_p0 }
  0x31   : > { %734 = shalt.err (!%p731_p3)
}
  0x32   : > { %s802_s24 = smov 512   ;;  %s803_s26 = smov 32  }
  0x33   : > { %112 = dma.hbm_to_vmem [thread:$0]  (%p641_p13), %s885_s30, %s874_s23, %s887_s2, %s877_s25, %s802_s24, %s802_s24, %s803_s26  }
  0x34 PF: > { %p646_p2 = scmp.ge.s32.totalorder %s799_s9, 1  ;;  %p114_p4 = scmp.lt.s32.totalorder %s799_s9, 3 }
  0x36   : > { %p115_p5 = pnand %p646_p2, %p114_p4 }
  0x37   : > { %s916_s27 = sand.u32 (!%p115_p5), 1, %s791_s7  }
  0x38   : > { %118 = sbr.rel (%p115_p5) target bundleno = 157 (0x9d), region = 24  ;;  %s647_s28 = sshll.u32 (!%p115_p5), %s916_s27, 10 }
  0x39   : > { %s121_s29 = scalar_lea.sflag (!%p115_p5), [#allocation3], %s916_s27  ;;  %s920_s3 = scalar_lea.vmem (!%p115_p5), [#allocation2], %s647_s28 }
  0x3d   : > { %778 = dma.done.wait (%p856_p6), %s121_s29, 16384  }
  0x3e   : > { %780 = vsyncadd (%p856_p6), %s121_s29, 4294950912  ;;  %v155_v0 = vld [vmem:[%s920_s3] sm:$0xff]  ;;  %v156_v1 = vld [vmem:[%s920_s3 + $0x8] sm:$0xff]  ;;  %s935_s16 = scalar_lea.vmem [#allocation5], %s647_s28  ;;  %s540_s23 = scalar_lea.sflag [#allocation4], %s916_s27 }
  0x3f   : > { %v157_v2 = vld [vmem:[%s920_s3 + $0x10] sm:$0xff]  ;;  %v283_v3 = vmax.f32 %v155_v0, 0.0  ;;  %v284_v4 = vmax.f32 %v156_v1, 0.0  ;;  %v158_v6 = vld [vmem:[%s920_s3 + $0x18] sm:$0xff]  ;;  %v159_v7 = vld [vmem:[%s920_s3 + $0x20] sm:$0xff]  ;;  %s650_s25 = sshll.u32 (%p861_p9), %s838_s10, 5 }
  0x40   : > { %v285_v5 = vmax.f32 %v157_v2, 0.0  ;;  %v160_v8 = vld [vmem:[%s920_s3 + $0x28] sm:$0xff]  ;;  %v286_v9 = vmax.f32 %v158_v6, 0.0  ;;  %v287_v10 = vmax.f32 %v159_v7, 0.0  ;;  %v161_v12 = vld [vmem:[%s920_s3 + $0x30] sm:$0xff]  ;;  %v162_v13 = vld [vmem:[%s920_s3 + $0x38] sm:$0xff] }
  0x41   : > { %v288_v11 = vmax.f32 %v160_v8, 0.0  ;;  %v163_v14 = vld [vmem:[%s920_s3 + $0x40] sm:$0xff]  ;;  %411 = vst [vmem:[%s935_s16] sm:$0xff] %v283_v3  ;;  %412 = vst [vmem:[%s935_s16 + $0x8] sm:$0xff] %v284_v4  ;;  %v289_v15 = vmax.f32 %v161_v12, 0.0  ;;  %v290_v16 = vmax.f32 %v162_v13, 0.0  ;;  %v164_v18 = vld [vmem:[%s920_s3 + $0x48] sm:$0xff] }
  0x42   : > { %413 = vst [vmem:[%s935_s16 + $0x10] sm:$0xff] %v285_v5  ;;  %v291_v17 = vmax.f32 %v163_v14, 0.0  ;;  %v165_v19 = vld [vmem:[%s920_s3 + $0x50] sm:$0xff]  ;;  %v166_v20 = vld [vmem:[%s920_s3 + $0x58] sm:$0xff]  ;;  %414 = vst [vmem:[%s935_s16 + $0x18] sm:$0xff] %v286_v9  ;;  %v292_v21 = vmax.f32 %v164_v18, 0.0 }
  0x43   : > { %415 = vst [vmem:[%s935_s16 + $0x20] sm:$0xff] %v287_v10  ;;  %416 = vst [vmem:[%s935_s16 + $0x28] sm:$0xff] %v288_v11  ;;  %v293_v22 = vmax.f32 %v165_v19, 0.0  ;;  %v294_v23 = vmax.f32 %v166_v20, 0.0  ;;  %v167_v24 = vld [vmem:[%s920_s3 + $0x60] sm:$0xff]  ;;  %v168_v25 = vld [vmem:[%s920_s3 + $0x68] sm:$0xff] }
  0x44   : > { %v169_v26 = vld [vmem:[%s920_s3 + $0x70] sm:$0xff]  ;;  %417 = vst [vmem:[%s935_s16 + $0x30] sm:$0xff] %v289_v15  ;;  %418 = vst [vmem:[%s935_s16 + $0x38] sm:$0xff] %v290_v16  ;;  %v295_v27 = vmax.f32 %v167_v24, 0.0  ;;  %v296_v28 = vmax.f32 %v168_v25, 0.0  ;;  %v170_v30 = vld [vmem:[%s920_s3 + $0x78] sm:$0xff] }
  0x45   : > { %419 = vst [vmem:[%s935_s16 + $0x40] sm:$0xff] %v291_v17  ;;  %v297_v29 = vmax.f32 %v169_v26, 0.0  ;;  %v171_v31 = vld [vmem:[%s920_s3 + $0x80] sm:$0xff]  ;;  %v172_v32 = vld [vmem:[%s920_s3 + $0x88] sm:$0xff]  ;;  %420 = vst [vmem:[%s935_s16 + $0x48] sm:$0xff] %v292_v21  ;;  %v298_v33 = vmax.f32 %v170_v30, 0.0 }
  0x46   : > { %421 = vst [vmem:[%s935_s16 + $0x50] sm:$0xff] %v293_v22  ;;  %422 = vst [vmem:[%s935_s16 + $0x58] sm:$0xff] %v294_v23  ;;  %v299_v34 = vmax.f32 %v171_v31, 0.0  ;;  %v300_v35 = vmax.f32 %v172_v32, 0.0  ;;  %v173_v36 = vld [vmem:[%s920_s3 + $0x90] sm:$0xff]  ;;  %v174_v37 = vld [vmem:[%s920_s3 + $0x98] sm:$0xff] }
  0x47   : > { %v175_v38 = vld [vmem:[%s920_s3 + $0xa0] sm:$0xff]  ;;  %423 = vst [vmem:[%s935_s16 + $0x60] sm:$0xff] %v295_v27  ;;  %424 = vst [vmem:[%s935_s16 + $0x68] sm:$0xff] %v296_v28  ;;  %v301_v39 = vmax.f32 %v173_v36, 0.0  ;;  %v302_v40 = vmax.f32 %v174_v37, 0.0  ;;  %v176_v42 = vld [vmem:[%s920_s3 + $0xa8] sm:$0xff] }
  0x48   : > { %425 = vst [vmem:[%s935_s16 + $0x70] sm:$0xff] %v297_v29  ;;  %v303_v41 = vmax.f32 %v175_v38, 0.0  ;;  %v177_v43 = vld [vmem:[%s920_s3 + $0xb0] sm:$0xff]  ;;  %v178_v44 = vld [vmem:[%s920_s3 + $0xb8] sm:$0xff]  ;;  %426 = vst [vmem:[%s935_s16 + $0x78] sm:$0xff] %v298_v33  ;;  %v304_v45 = vmax.f32 %v176_v42, 0.0 }
  0x49   : > { %427 = vst [vmem:[%s935_s16 + $0x80] sm:$0xff] %v299_v34  ;;  %428 = vst [vmem:[%s935_s16 + $0x88] sm:$0xff] %v300_v35  ;;  %v305_v46 = vmax.f32 %v177_v43, 0.0  ;;  %v306_v47 = vmax.f32 %v178_v44, 0.0  ;;  %v179_v48 = vld [vmem:[%s920_s3 + $0xc0] sm:$0xff]  ;;  %v180_v49 = vld [vmem:[%s920_s3 + $0xc8] sm:$0xff] }
  0x4a   : > { %v181_v50 = vld [vmem:[%s920_s3 + $0xd0] sm:$0xff]  ;;  %429 = vst [vmem:[%s935_s16 + $0x90] sm:$0xff] %v301_v39  ;;  %430 = vst [vmem:[%s935_s16 + $0x98] sm:$0xff] %v302_v40  ;;  %v307_v51 = vmax.f32 %v179_v48, 0.0  ;;  %v308_v52 = vmax.f32 %v180_v49, 0.0  ;;  %v182_v54 = vld [vmem:[%s920_s3 + $0xd8] sm:$0xff] }
  0x4b   : > { %431 = vst [vmem:[%s935_s16 + $0xa0] sm:$0xff] %v303_v41  ;;  %v309_v53 = vmax.f32 %v181_v50, 0.0  ;;  %v183_v55 = vld [vmem:[%s920_s3 + $0xe0] sm:$0xff]  ;;  %v184_v56 = vld [vmem:[%s920_s3 + $0xe8] sm:$0xff]  ;;  %432 = vst [vmem:[%s935_s16 + $0xa8] sm:$0xff] %v304_v45  ;;  %v310_v57 = vmax.f32 %v182_v54, 0.0 }
  0x4c   : > { %433 = vst [vmem:[%s935_s16 + $0xb0] sm:$0xff] %v305_v46  ;;  %434 = vst [vmem:[%s935_s16 + $0xb8] sm:$0xff] %v306_v47  ;;  %v311_v58 = vmax.f32 %v183_v55, 0.0  ;;  %v312_v59 = vmax.f32 %v184_v56, 0.0  ;;  %v185_v60 = vld [vmem:[%s920_s3 + $0xf0] sm:$0xff]  ;;  %v186_v61 = vld [vmem:[%s920_s3 + $0xf8] sm:$0xff] }
  0x4d   : > { %v187_v62 = vld [vmem:[%s920_s3 + $0x100] sm:$0xff]  ;;  %435 = vst [vmem:[%s935_s16 + $0xc0] sm:$0xff] %v307_v51  ;;  %436 = vst [vmem:[%s935_s16 + $0xc8] sm:$0xff] %v308_v52  ;;  %v313_v63 = vmax.f32 %v185_v60, 0.0  ;;  %v314_v0 = vmax.f32 %v186_v61, 0.0  ;;  %v188_v2 = vld [vmem:[%s920_s3 + $0x108] sm:$0xff] }
  0x4e   : > { %437 = vst [vmem:[%s935_s16 + $0xd0] sm:$0xff] %v309_v53  ;;  %v315_v1 = vmax.f32 %v187_v62, 0.0  ;;  %v189_v3 = vld [vmem:[%s920_s3 + $0x110] sm:$0xff]  ;;  %v190_v4 = vld [vmem:[%s920_s3 + $0x118] sm:$0xff]  ;;  %438 = vst [vmem:[%s935_s16 + $0xd8] sm:$0xff] %v310_v57  ;;  %v316_v5 = vmax.f32 %v188_v2, 0.0 }
  0x4f   : > { %439 = vst [vmem:[%s935_s16 + $0xe0] sm:$0xff] %v311_v58  ;;  %440 = vst [vmem:[%s935_s16 + $0xe8] sm:$0xff] %v312_v59  ;;  %v317_v6 = vmax.f32 %v189_v3, 0.0  ;;  %v318_v7 = vmax.f32 %v190_v4, 0.0  ;;  %v191_v8 = vld [vmem:[%s920_s3 + $0x120] sm:$0xff]  ;;  %v192_v9 = vld [vmem:[%s920_s3 + $0x128] sm:$0xff] }
  0x50   : > { %v193_v10 = vld [vmem:[%s920_s3 + $0x130] sm:$0xff]  ;;  %441 = vst [vmem:[%s935_s16 + $0xf0] sm:$0xff] %v313_v63  ;;  %442 = vst [vmem:[%s935_s16 + $0xf8] sm:$0xff] %v314_v0  ;;  %v319_v11 = vmax.f32 %v191_v8, 0.0  ;;  %v320_v12 = vmax.f32 %v192_v9, 0.0  ;;  %v194_v14 = vld [vmem:[%s920_s3 + $0x138] sm:$0xff] }
  0x51   : > { %443 = vst [vmem:[%s935_s16 + $0x100] sm:$0xff] %v315_v1  ;;  %v321_v13 = vmax.f32 %v193_v10, 0.0  ;;  %v195_v15 = vld [vmem:[%s920_s3 + $0x140] sm:$0xff]  ;;  %v196_v16 = vld [vmem:[%s920_s3 + $0x148] sm:$0xff]  ;;  %444 = vst [vmem:[%s935_s16 + $0x108] sm:$0xff] %v316_v5  ;;  %v322_v17 = vmax.f32 %v194_v14, 0.0 }
  0x52   : > { %445 = vst [vmem:[%s935_s16 + $0x110] sm:$0xff] %v317_v6  ;;  %446 = vst [vmem:[%s935_s16 + $0x118] sm:$0xff] %v318_v7  ;;  %v323_v18 = vmax.f32 %v195_v15, 0.0  ;;  %v324_v19 = vmax.f32 %v196_v16, 0.0  ;;  %v197_v20 = vld [vmem:[%s920_s3 + $0x150] sm:$0xff]  ;;  %v198_v21 = vld [vmem:[%s920_s3 + $0x158] sm:$0xff] }
  0x53   : > { %v199_v22 = vld [vmem:[%s920_s3 + $0x160] sm:$0xff]  ;;  %447 = vst [vmem:[%s935_s16 + $0x120] sm:$0xff] %v319_v11  ;;  %448 = vst [vmem:[%s935_s16 + $0x128] sm:$0xff] %v320_v12  ;;  %v325_v23 = vmax.f32 %v197_v20, 0.0  ;;  %v326_v24 = vmax.f32 %v198_v21, 0.0  ;;  %v200_v26 = vld [vmem:[%s920_s3 + $0x168] sm:$0xff] }
  0x54   : > { %449 = vst [vmem:[%s935_s16 + $0x130] sm:$0xff] %v321_v13  ;;  %v327_v25 = vmax.f32 %v199_v22, 0.0  ;;  %v201_v27 = vld [vmem:[%s920_s3 + $0x170] sm:$0xff]  ;;  %v202_v28 = vld [vmem:[%s920_s3 + $0x178] sm:$0xff]  ;;  %450 = vst [vmem:[%s935_s16 + $0x138] sm:$0xff] %v322_v17  ;;  %v328_v29 = vmax.f32 %v200_v26, 0.0 }
  0x55   : > { %451 = vst [vmem:[%s935_s16 + $0x140] sm:$0xff] %v323_v18  ;;  %452 = vst [vmem:[%s935_s16 + $0x148] sm:$0xff] %v324_v19  ;;  %v329_v30 = vmax.f32 %v201_v27, 0.0  ;;  %v330_v31 = vmax.f32 %v202_v28, 0.0  ;;  %v203_v32 = vld [vmem:[%s920_s3 + $0x180] sm:$0xff]  ;;  %v204_v33 = vld [vmem:[%s920_s3 + $0x188] sm:$0xff] }
  0x56   : > { %v205_v34 = vld [vmem:[%s920_s3 + $0x190] sm:$0xff]  ;;  %453 = vst [vmem:[%s935_s16 + $0x150] sm:$0xff] %v325_v23  ;;  %454 = vst [vmem:[%s935_s16 + $0x158] sm:$0xff] %v326_v24  ;;  %v331_v35 = vmax.f32 %v203_v32, 0.0  ;;  %v332_v36 = vmax.f32 %v204_v33, 0.0  ;;  %v206_v38 = vld [vmem:[%s920_s3 + $0x198] sm:$0xff] }
  0x57   : > { %455 = vst [vmem:[%s935_s16 + $0x160] sm:$0xff] %v327_v25  ;;  %v333_v37 = vmax.f32 %v205_v34, 0.0  ;;  %v207_v39 = vld [vmem:[%s920_s3 + $0x1a0] sm:$0xff]  ;;  %v208_v40 = vld [vmem:[%s920_s3 + $0x1a8] sm:$0xff]  ;;  %456 = vst [vmem:[%s935_s16 + $0x168] sm:$0xff] %v328_v29  ;;  %v334_v41 = vmax.f32 %v206_v38, 0.0 }
  0x58   : > { %457 = vst [vmem:[%s935_s16 + $0x170] sm:$0xff] %v329_v30  ;;  %458 = vst [vmem:[%s935_s16 + $0x178] sm:$0xff] %v330_v31  ;;  %v335_v42 = vmax.f32 %v207_v39, 0.0  ;;  %v336_v43 = vmax.f32 %v208_v40, 0.0  ;;  %v209_v44 = vld [vmem:[%s920_s3 + $0x1b0] sm:$0xff]  ;;  %v210_v45 = vld [vmem:[%s920_s3 + $0x1b8] sm:$0xff] }
  0x59   : > { %v211_v46 = vld [vmem:[%s920_s3 + $0x1c0] sm:$0xff]  ;;  %459 = vst [vmem:[%s935_s16 + $0x180] sm:$0xff] %v331_v35  ;;  %460 = vst [vmem:[%s935_s16 + $0x188] sm:$0xff] %v332_v36  ;;  %v337_v47 = vmax.f32 %v209_v44, 0.0  ;;  %v338_v48 = vmax.f32 %v210_v45, 0.0  ;;  %v212_v50 = vld [vmem:[%s920_s3 + $0x1c8] sm:$0xff] }
  0x5a   : > { %461 = vst [vmem:[%s935_s16 + $0x190] sm:$0xff] %v333_v37  ;;  %v339_v49 = vmax.f32 %v211_v46, 0.0  ;;  %v213_v51 = vld [vmem:[%s920_s3 + $0x1d0] sm:$0xff]  ;;  %v214_v52 = vld [vmem:[%s920_s3 + $0x1d8] sm:$0xff]  ;;  %462 = vst [vmem:[%s935_s16 + $0x198] sm:$0xff] %v334_v41  ;;  %v340_v53 = vmax.f32 %v212_v50, 0.0 }
  0x5b   : > { %463 = vst [vmem:[%s935_s16 + $0x1a0] sm:$0xff] %v335_v42  ;;  %464 = vst [vmem:[%s935_s16 + $0x1a8] sm:$0xff] %v336_v43  ;;  %v341_v54 = vmax.f32 %v213_v51, 0.0  ;;  %v342_v55 = vmax.f32 %v214_v52, 0.0  ;;  %v215_v56 = vld [vmem:[%s920_s3 + $0x1e0] sm:$0xff]  ;;  %v216_v57 = vld [vmem:[%s920_s3 + $0x1e8] sm:$0xff] }
  0x5c   : > { %v217_v58 = vld [vmem:[%s920_s3 + $0x1f0] sm:$0xff]  ;;  %465 = vst [vmem:[%s935_s16 + $0x1b0] sm:$0xff] %v337_v47  ;;  %466 = vst [vmem:[%s935_s16 + $0x1b8] sm:$0xff] %v338_v48  ;;  %v343_v59 = vmax.f32 %v215_v56, 0.0  ;;  %v344_v60 = vmax.f32 %v216_v57, 0.0  ;;  %v218_v62 = vld [vmem:[%s920_s3 + $0x1f8] sm:$0xff] }
  0x5d   : > { %467 = vst [vmem:[%s935_s16 + $0x1c0] sm:$0xff] %v339_v49  ;;  %v345_v61 = vmax.f32 %v217_v58, 0.0  ;;  %v219_v63 = vld [vmem:[%s920_s3 + $0x200] sm:$0xff]  ;;  %v220_v0 = vld [vmem:[%s920_s3 + $0x208] sm:$0xff]  ;;  %468 = vst [vmem:[%s935_s16 + $0x1c8] sm:$0xff] %v340_v53  ;;  %v346_v1 = vmax.f32 %v218_v62, 0.0 }
  0x5e   : > { %469 = vst [vmem:[%s935_s16 + $0x1d0] sm:$0xff] %v341_v54  ;;  %470 = vst [vmem:[%s935_s16 + $0x1d8] sm:$0xff] %v342_v55  ;;  %v347_v2 = vmax.f32 %v219_v63, 0.0  ;;  %v348_v3 = vmax.f32 %v220_v0, 0.0  ;;  %v221_v4 = vld [vmem:[%s920_s3 + $0x210] sm:$0xff]  ;;  %v222_v5 = vld [vmem:[%s920_s3 + $0x218] sm:$0xff] }
  0x5f   : > { %v223_v6 = vld [vmem:[%s920_s3 + $0x220] sm:$0xff]  ;;  %471 = vst [vmem:[%s935_s16 + $0x1e0] sm:$0xff] %v343_v59  ;;  %472 = vst [vmem:[%s935_s16 + $0x1e8] sm:$0xff] %v344_v60  ;;  %v349_v7 = vmax.f32 %v221_v4, 0.0  ;;  %v350_v8 = vmax.f32 %v222_v5, 0.0  ;;  %v224_v10 = vld [vmem:[%s920_s3 + $0x228] sm:$0xff] }
  0x60   : > { %473 = vst [vmem:[%s935_s16 + $0x1f0] sm:$0xff] %v345_v61  ;;  %v351_v9 = vmax.f32 %v223_v6, 0.0  ;;  %v225_v11 = vld [vmem:[%s920_s3 + $0x230] sm:$0xff]  ;;  %v226_v12 = vld [vmem:[%s920_s3 + $0x238] sm:$0xff]  ;;  %474 = vst [vmem:[%s935_s16 + $0x1f8] sm:$0xff] %v346_v1  ;;  %v352_v13 = vmax.f32 %v224_v10, 0.0 }
  0x61   : > { %475 = vst [vmem:[%s935_s16 + $0x200] sm:$0xff] %v347_v2  ;;  %476 = vst [vmem:[%s935_s16 + $0x208] sm:$0xff] %v348_v3  ;;  %v353_v14 = vmax.f32 %v225_v11, 0.0  ;;  %v354_v15 = vmax.f32 %v226_v12, 0.0  ;;  %v227_v16 = vld [vmem:[%s920_s3 + $0x240] sm:$0xff]  ;;  %v228_v17 = vld [vmem:[%s920_s3 + $0x248] sm:$0xff] }
  0x62   : > { %v229_v18 = vld [vmem:[%s920_s3 + $0x250] sm:$0xff]  ;;  %477 = vst [vmem:[%s935_s16 + $0x210] sm:$0xff] %v349_v7  ;;  %478 = vst [vmem:[%s935_s16 + $0x218] sm:$0xff] %v350_v8  ;;  %v355_v19 = vmax.f32 %v227_v16, 0.0  ;;  %v356_v20 = vmax.f32 %v228_v17, 0.0  ;;  %v230_v22 = vld [vmem:[%s920_s3 + $0x258] sm:$0xff] }
  0x63   : > { %479 = vst [vmem:[%s935_s16 + $0x220] sm:$0xff] %v351_v9  ;;  %v357_v21 = vmax.f32 %v229_v18, 0.0  ;;  %v231_v23 = vld [vmem:[%s920_s3 + $0x260] sm:$0xff]  ;;  %v232_v24 = vld [vmem:[%s920_s3 + $0x268] sm:$0xff]  ;;  %480 = vst [vmem:[%s935_s16 + $0x228] sm:$0xff] %v352_v13  ;;  %v358_v25 = vmax.f32 %v230_v22, 0.0 }
  0x64   : > { %481 = vst [vmem:[%s935_s16 + $0x230] sm:$0xff] %v353_v14  ;;  %482 = vst [vmem:[%s935_s16 + $0x238] sm:$0xff] %v354_v15  ;;  %v359_v26 = vmax.f32 %v231_v23, 0.0  ;;  %v360_v27 = vmax.f32 %v232_v24, 0.0  ;;  %v233_v28 = vld [vmem:[%s920_s3 + $0x270] sm:$0xff]  ;;  %v234_v29 = vld [vmem:[%s920_s3 + $0x278] sm:$0xff] }
  0x65   : > { %v235_v30 = vld [vmem:[%s920_s3 + $0x280] sm:$0xff]  ;;  %483 = vst [vmem:[%s935_s16 + $0x240] sm:$0xff] %v355_v19  ;;  %484 = vst [vmem:[%s935_s16 + $0x248] sm:$0xff] %v356_v20  ;;  %v361_v31 = vmax.f32 %v233_v28, 0.0  ;;  %v362_v32 = vmax.f32 %v234_v29, 0.0  ;;  %v236_v34 = vld [vmem:[%s920_s3 + $0x288] sm:$0xff] }
  0x66   : > { %485 = vst [vmem:[%s935_s16 + $0x250] sm:$0xff] %v357_v21  ;;  %v363_v33 = vmax.f32 %v235_v30, 0.0  ;;  %v237_v35 = vld [vmem:[%s920_s3 + $0x290] sm:$0xff]  ;;  %v238_v36 = vld [vmem:[%s920_s3 + $0x298] sm:$0xff]  ;;  %486 = vst [vmem:[%s935_s16 + $0x258] sm:$0xff] %v358_v25  ;;  %v364_v37 = vmax.f32 %v236_v34, 0.0 }
  0x67   : > { %487 = vst [vmem:[%s935_s16 + $0x260] sm:$0xff] %v359_v26  ;;  %488 = vst [vmem:[%s935_s16 + $0x268] sm:$0xff] %v360_v27  ;;  %v365_v38 = vmax.f32 %v237_v35, 0.0  ;;  %v366_v39 = vmax.f32 %v238_v36, 0.0  ;;  %v239_v40 = vld [vmem:[%s920_s3 + $0x2a0] sm:$0xff]  ;;  %v240_v41 = vld [vmem:[%s920_s3 + $0x2a8] sm:$0xff] }
  0x68   : > { %v241_v42 = vld [vmem:[%s920_s3 + $0x2b0] sm:$0xff]  ;;  %489 = vst [vmem:[%s935_s16 + $0x270] sm:$0xff] %v361_v31  ;;  %490 = vst [vmem:[%s935_s16 + $0x278] sm:$0xff] %v362_v32  ;;  %v367_v43 = vmax.f32 %v239_v40, 0.0  ;;  %v368_v44 = vmax.f32 %v240_v41, 0.0  ;;  %v242_v46 = vld [vmem:[%s920_s3 + $0x2b8] sm:$0xff] }
  0x69   : > { %491 = vst [vmem:[%s935_s16 + $0x280] sm:$0xff] %v363_v33  ;;  %v369_v45 = vmax.f32 %v241_v42, 0.0  ;;  %v243_v47 = vld [vmem:[%s920_s3 + $0x2c0] sm:$0xff]  ;;  %v244_v48 = vld [vmem:[%s920_s3 + $0x2c8] sm:$0xff]  ;;  %492 = vst [vmem:[%s935_s16 + $0x288] sm:$0xff] %v364_v37  ;;  %v370_v49 = vmax.f32 %v242_v46, 0.0 }
  0x6a   : > { %493 = vst [vmem:[%s935_s16 + $0x290] sm:$0xff] %v365_v38  ;;  %494 = vst [vmem:[%s935_s16 + $0x298] sm:$0xff] %v366_v39  ;;  %v371_v50 = vmax.f32 %v243_v47, 0.0  ;;  %v372_v51 = vmax.f32 %v244_v48, 0.0  ;;  %v245_v52 = vld [vmem:[%s920_s3 + $0x2d0] sm:$0xff]  ;;  %v246_v53 = vld [vmem:[%s920_s3 + $0x2d8] sm:$0xff] }
  0x6b   : > { %v247_v54 = vld [vmem:[%s920_s3 + $0x2e0] sm:$0xff]  ;;  %495 = vst [vmem:[%s935_s16 + $0x2a0] sm:$0xff] %v367_v43  ;;  %496 = vst [vmem:[%s935_s16 + $0x2a8] sm:$0xff] %v368_v44  ;;  %v373_v55 = vmax.f32 %v245_v52, 0.0  ;;  %v374_v56 = vmax.f32 %v246_v53, 0.0  ;;  %v248_v58 = vld [vmem:[%s920_s3 + $0x2e8] sm:$0xff] }
  0x6c   : > { %497 = vst [vmem:[%s935_s16 + $0x2b0] sm:$0xff] %v369_v45  ;;  %v375_v57 = vmax.f32 %v247_v54, 0.0  ;;  %v249_v59 = vld [vmem:[%s920_s3 + $0x2f0] sm:$0xff]  ;;  %v250_v60 = vld [vmem:[%s920_s3 + $0x2f8] sm:$0xff]  ;;  %498 = vst [vmem:[%s935_s16 + $0x2b8] sm:$0xff] %v370_v49  ;;  %v376_v61 = vmax.f32 %v248_v58, 0.0 }
  0x6d   : > { %499 = vst [vmem:[%s935_s16 + $0x2c0] sm:$0xff] %v371_v50  ;;  %500 = vst [vmem:[%s935_s16 + $0x2c8] sm:$0xff] %v372_v51  ;;  %v377_v62 = vmax.f32 %v249_v59, 0.0  ;;  %v378_v63 = vmax.f32 %v250_v60, 0.0  ;;  %v251_v0 = vld [vmem:[%s920_s3 + $0x300] sm:$0xff]  ;;  %v252_v1 = vld [vmem:[%s920_s3 + $0x308] sm:$0xff] }
  0x6e   : > { %v253_v2 = vld [vmem:[%s920_s3 + $0x310] sm:$0xff]  ;;  %501 = vst [vmem:[%s935_s16 + $0x2d0] sm:$0xff] %v373_v55  ;;  %502 = vst [vmem:[%s935_s16 + $0x2d8] sm:$0xff] %v374_v56  ;;  %v379_v3 = vmax.f32 %v251_v0, 0.0  ;;  %v380_v4 = vmax.f32 %v252_v1, 0.0  ;;  %v254_v6 = vld [vmem:[%s920_s3 + $0x318] sm:$0xff] }
  0x6f   : > { %503 = vst [vmem:[%s935_s16 + $0x2e0] sm:$0xff] %v375_v57  ;;  %v381_v5 = vmax.f32 %v253_v2, 0.0  ;;  %v255_v7 = vld [vmem:[%s920_s3 + $0x320] sm:$0xff]  ;;  %v256_v8 = vld [vmem:[%s920_s3 + $0x328] sm:$0xff]  ;;  %504 = vst [vmem:[%s935_s16 + $0x2e8] sm:$0xff] %v376_v61  ;;  %v382_v9 = vmax.f32 %v254_v6, 0.0 }
  0x70   : > { %505 = vst [vmem:[%s935_s16 + $0x2f0] sm:$0xff] %v377_v62  ;;  %506 = vst [vmem:[%s935_s16 + $0x2f8] sm:$0xff] %v378_v63  ;;  %v383_v10 = vmax.f32 %v255_v7, 0.0  ;;  %v384_v11 = vmax.f32 %v256_v8, 0.0  ;;  %v257_v12 = vld [vmem:[%s920_s3 + $0x330] sm:$0xff]  ;;  %v258_v13 = vld [vmem:[%s920_s3 + $0x338] sm:$0xff] }
  0x71   : > { %v259_v14 = vld [vmem:[%s920_s3 + $0x340] sm:$0xff]  ;;  %507 = vst [vmem:[%s935_s16 + $0x300] sm:$0xff] %v379_v3  ;;  %508 = vst [vmem:[%s935_s16 + $0x308] sm:$0xff] %v380_v4  ;;  %v385_v15 = vmax.f32 %v257_v12, 0.0  ;;  %v386_v16 = vmax.f32 %v258_v13, 0.0  ;;  %v260_v18 = vld [vmem:[%s920_s3 + $0x348] sm:$0xff] }
  0x72   : > { %509 = vst [vmem:[%s935_s16 + $0x310] sm:$0xff] %v381_v5  ;;  %v387_v17 = vmax.f32 %v259_v14, 0.0  ;;  %v261_v19 = vld [vmem:[%s920_s3 + $0x350] sm:$0xff]  ;;  %v262_v20 = vld [vmem:[%s920_s3 + $0x358] sm:$0xff]  ;;  %510 = vst [vmem:[%s935_s16 + $0x318] sm:$0xff] %v382_v9  ;;  %v388_v21 = vmax.f32 %v260_v18, 0.0 }
  0x73   : > { %511 = vst [vmem:[%s935_s16 + $0x320] sm:$0xff] %v383_v10  ;;  %512 = vst [vmem:[%s935_s16 + $0x328] sm:$0xff] %v384_v11  ;;  %v389_v22 = vmax.f32 %v261_v19, 0.0  ;;  %v390_v23 = vmax.f32 %v262_v20, 0.0  ;;  %v263_v24 = vld [vmem:[%s920_s3 + $0x360] sm:$0xff]  ;;  %v264_v25 = vld [vmem:[%s920_s3 + $0x368] sm:$0xff] }
  0x74   : > { %v265_v26 = vld [vmem:[%s920_s3 + $0x370] sm:$0xff]  ;;  %513 = vst [vmem:[%s935_s16 + $0x330] sm:$0xff] %v385_v15  ;;  %514 = vst [vmem:[%s935_s16 + $0x338] sm:$0xff] %v386_v16  ;;  %v391_v27 = vmax.f32 %v263_v24, 0.0  ;;  %v392_v28 = vmax.f32 %v264_v25, 0.0  ;;  %v266_v30 = vld [vmem:[%s920_s3 + $0x378] sm:$0xff] }
  0x75   : > { %515 = vst [vmem:[%s935_s16 + $0x340] sm:$0xff] %v387_v17  ;;  %v393_v29 = vmax.f32 %v265_v26, 0.0  ;;  %v267_v31 = vld [vmem:[%s920_s3 + $0x380] sm:$0xff]  ;;  %v268_v32 = vld [vmem:[%s920_s3 + $0x388] sm:$0xff]  ;;  %516 = vst [vmem:[%s935_s16 + $0x348] sm:$0xff] %v388_v21  ;;  %v394_v33 = vmax.f32 %v266_v30, 0.0 }
  0x76   : > { %517 = vst [vmem:[%s935_s16 + $0x350] sm:$0xff] %v389_v22  ;;  %518 = vst [vmem:[%s935_s16 + $0x358] sm:$0xff] %v390_v23  ;;  %v395_v34 = vmax.f32 %v267_v31, 0.0  ;;  %v396_v35 = vmax.f32 %v268_v32, 0.0  ;;  %v269_v36 = vld [vmem:[%s920_s3 + $0x390] sm:$0xff]  ;;  %v270_v37 = vld [vmem:[%s920_s3 + $0x398] sm:$0xff] }
  0x77   : > { %v271_v38 = vld [vmem:[%s920_s3 + $0x3a0] sm:$0xff]  ;;  %519 = vst [vmem:[%s935_s16 + $0x360] sm:$0xff] %v391_v27  ;;  %520 = vst [vmem:[%s935_s16 + $0x368] sm:$0xff] %v392_v28  ;;  %v397_v39 = vmax.f32 %v269_v36, 0.0  ;;  %v398_v40 = vmax.f32 %v270_v37, 0.0  ;;  %v272_v42 = vld [vmem:[%s920_s3 + $0x3a8] sm:$0xff] }
  0x78   : > { %521 = vst [vmem:[%s935_s16 + $0x370] sm:$0xff] %v393_v29  ;;  %v399_v41 = vmax.f32 %v271_v38, 0.0  ;;  %v273_v43 = vld [vmem:[%s920_s3 + $0x3b0] sm:$0xff]  ;;  %v274_v44 = vld [vmem:[%s920_s3 + $0x3b8] sm:$0xff]  ;;  %522 = vst [vmem:[%s935_s16 + $0x378] sm:$0xff] %v394_v33  ;;  %v400_v45 = vmax.f32 %v272_v42, 0.0 }
  0x79   : > { %523 = vst [vmem:[%s935_s16 + $0x380] sm:$0xff] %v395_v34  ;;  %524 = vst [vmem:[%s935_s16 + $0x388] sm:$0xff] %v396_v35  ;;  %v401_v46 = vmax.f32 %v273_v43, 0.0  ;;  %v402_v47 = vmax.f32 %v274_v44, 0.0  ;;  %v275_v48 = vld [vmem:[%s920_s3 + $0x3c0] sm:$0xff]  ;;  %v276_v49 = vld [vmem:[%s920_s3 + $0x3c8] sm:$0xff] }
  0x7a   : > { %v277_v50 = vld [vmem:[%s920_s3 + $0x3d0] sm:$0xff]  ;;  %525 = vst [vmem:[%s935_s16 + $0x390] sm:$0xff] %v397_v39  ;;  %526 = vst [vmem:[%s935_s16 + $0x398] sm:$0xff] %v398_v40  ;;  %v403_v51 = vmax.f32 %v275_v48, 0.0  ;;  %v404_v52 = vmax.f32 %v276_v49, 0.0  ;;  %v278_v54 = vld [vmem:[%s920_s3 + $0x3d8] sm:$0xff] }
  0x7b   : > { %527 = vst [vmem:[%s935_s16 + $0x3a0] sm:$0xff] %v399_v41  ;;  %v405_v53 = vmax.f32 %v277_v50, 0.0  ;;  %v279_v55 = vld [vmem:[%s920_s3 + $0x3e0] sm:$0xff]  ;;  %v280_v56 = vld [vmem:[%s920_s3 + $0x3e8] sm:$0xff]  ;;  %528 = vst [vmem:[%s935_s16 + $0x3a8] sm:$0xff] %v400_v45  ;;  %v406_v57 = vmax.f32 %v278_v54, 0.0 }
  0x7c   : > { %529 = vst [vmem:[%s935_s16 + $0x3b0] sm:$0xff] %v401_v46  ;;  %530 = vst [vmem:[%s935_s16 + $0x3b8] sm:$0xff] %v402_v47  ;;  %v407_v58 = vmax.f32 %v279_v55, 0.0  ;;  %v408_v59 = vmax.f32 %v280_v56, 0.0  ;;  %v281_v60 = vld [vmem:[%s920_s3 + $0x3f0] sm:$0xff]  ;;  %v282_v61 = vld [vmem:[%s920_s3 + $0x3f8] sm:$0xff] }
  0x7d   : > { %531 = vst [vmem:[%s935_s16 + $0x3c0] sm:$0xff] %v403_v51  ;;  %532 = vst [vmem:[%s935_s16 + $0x3c8] sm:$0xff] %v404_v52  ;;  %v409_v62 = vmax.f32 %v281_v60, 0.0  ;;  %v410_v63 = vmax.f32 %v282_v61, 0.0  ;;  %546 = sbr.rel (!%p861_p9) target bundleno = 157 (0x9d), region = 32  ;;  %s548_s30 = ssub.s32 (%p861_p9), 46, %s650_s25 }
  0x7e   : > { %533 = vst [vmem:[%s935_s16 + $0x3d0] sm:$0xff] %v405_v53  ;;  %534 = vst [vmem:[%s935_s16 + $0x3d8] sm:$0xff] %v406_v57  ;;  %p549_p6 = scmp.lt.s32.totalorder (%p861_p9), %s548_s30, 32 }
  0x7f   : > { %535 = vst [vmem:[%s935_s16 + $0x3e0] sm:$0xff] %v407_v58  ;;  %536 = vst [vmem:[%s935_s16 + $0x3e8] sm:$0xff] %v408_v59 }
  0x80   : > { %537 = vst [vmem:[%s935_s16 + $0x3f0] sm:$0xff] %v409_v62  ;;  %538 = vst [vmem:[%s935_s16 + $0x3f8] sm:$0xff] %v410_v63 }
  0x82   : > { %s1261_s30 = smov (!%p549_p6, %s548_s30), 32 }
  0x83   : > { %s1188_s2 = sshll.u32 %s1261_s30, 9 }
  0x84   : > { %s554_s4 = ssub.s32 16384, %s1188_s2 }
  0x85   : > { %555 = vsyncadd %s540_s23, %s554_s4  ;;  %p653_p10 = scmp.ne.s32.totalorder %s1188_s2, 0  ;;  %s665_s17 = sshll.u32 %s838_s10, 14 }
  0x86   : > { %s1198_s13 = scalar_lea.hbm %s1247_s1, %s665_s17  ;;  %s561_s14 = sshll.u32 %s935_s16, 4  ;;  %s1201_s14 = int_to_ptr.vmem [resolvable:$true] %s561_s14 }
  0x87   : > { %s735_s19 = scalar_lea.vmem %s1201_s14, %s1188_s2  ;;  %s804_s20 = smov [#allocation5]  }
  0x88   : > { %p736_p9 = scmp.ne.s32.totalorder %s1201_s14, %s735_s19  ;;  %s739_s21 = sshll.u32 %s804_s20, 4  ;;  %s740_s21 = int_to_ptr.vmem [resolvable:$false] %s739_s21 }
  0x89   : > { %s741_s10 = scalar_lea.vmem %s740_s21, 32768  ;;  %p742_p7 = scmp.lt.s32.totalorder %s1201_s14, %s740_s21 }
  0x8a   : > { %p737_p11 = pnand %p736_p9, %p653_p10  ;;  %p743_p8 = scmp.lt.s32.totalorder %s741_s10, %s735_s19 }
  0x8c   : > { %p738_p13 = pneg %p737_p11  ;;  %p744_p12 = por %p743_p8, %p742_p7 }
  0x8e   : > { %p745_p0 = pnand %p744_p12, %p738_p13 }
  0x90   : > { %748 = shalt.err (!%p745_p0)
}
  0x91   : > { %s749_s22 = scalar_lea.hbm %s1198_s13, %s1188_s2  ;;  %s753_s28 = scalar_lea.hbm %s1247_s1, 23552 }
  0x92   : > { %p750_p1 = scmp.ne.s32.totalorder %s1198_s13, %s749_s22  ;;  %p754_p4 = scmp.lt.s32.totalorder %s1198_s13, %s1247_s1 }
  0x93   : > { %p755_p5 = scmp.lt.s32.totalorder %s753_s28, %s749_s22 }
  0x94   : > { %p751_p3 = pnand %p750_p1, %p653_p10 }
  0x95   : > { %p756_p6 = por %p755_p5, %p754_p4 }
  0x96   : > { %p752_p2 = pneg %p751_p3 }
  0x98   : > { %p757_p9 = pnand %p756_p6, %p752_p2 }
  0x9a   : > { %760 = shalt.err (!%p757_p9)
}
  0x9b   : > { %s805_s16 = smov 512   ;;  %s806_s25 = smov 32  }
  0x9c   : > { %567 = dma.vmem_to_hbm [thread:$0]  (%p653_p10), %s1201_s14, %s1188_s2, %s1198_s13, %s540_s23, %s805_s16, %s805_s16, %s806_s25  }
  0x9d PF: > { %s576_s30 = sand.u32 1, %s787_s6   ;;  %p1252_p11 = scmp.ne.s32.totalorder %s1251_s18, 0 }
  0x9e   : > { %p1253_p13 = scmp.ge.s32.totalorder %s799_s9, 2  ;;  %s577_s4 = scalar_lea.sflag [#allocation4], %s576_s30 }
  0xa0   : > { %p669_p7 = pnand %p1253_p13, %p1252_p11 }
  0xa2   : > { %p670_p8 = pneg %p669_p7 }
  0xa4   : > { %782 = dma.done.wait (%p670_p8), %s577_s4, 16384  }
  0xa5   : > { %784 = vsyncadd (%p670_p8), %s577_s4, 4294950912  ;;  %p14_p12 = scmp.ge.s32.totalorder %s842_s12, 4   ;;  %s1254_s6 = smov %s791_s7 }
  0xa6   : > { %s1255_s7 = smov %s795_s8  ;;  %s1256_s8 = smov %s854_s15 }
  0xa7   : > { %s1257_s9 = smov %s842_s12  ;;  %16 = sbr.rel (!%p14_p12) target bundleno = 5 (0x5), region = 69 }
  0xac   :  { %582 = vsyncpa [#allocation3], 1 }
  0xad   :  { %584 = vsyncpa [#allocation3 + $0x1], 1 }
  0xae   :  { %585 = vsyncpa [#allocation4], 1 }
  0xaf   :  { %587 = vsyncpa [#allocation4 + $0x1], 1 }

</bundles_post_ra>
